<compile_context>
chip_gen: v5e
topology: v5e:2x2
jax: 0.10.0
libtpu: 0.0.40
codegen_flags: <defaults>
</compile_context>

<pallas_src>
import functools
import math

import jax
import jax.numpy as jnp
from jax import lax
from jax.experimental import pallas as pl
from jax.experimental.pallas import tpu as pltpu


def eca_kernel_size(in_channel, b=1, gama=2):
    """Replicates the ECAWeightModule kernel-size rule."""
    k = int(abs((math.log(in_channel, 2) + b) / gama))
    return k if k % 2 else k + 1


def _eca_kernel(w_ref, x_ref, out_ref, *, K, PAD, inv_hw):
    """w_ref: (K,) f32 taps in SMEM; x_ref: (Bblk, C, H*W) in VMEM; out_ref: (Bblk, C)."""
    x = x_ref[...].astype(jnp.float32)                     # (Bblk, C, H*W)

    # Global average pool: lane-dense reduction over the fused H*W axis.
    pooled = jnp.sum(x, axis=-1) * inv_hw                  # (Bblk, C)
    C = pooled.shape[-1]

    # Banded matrix for the 1D "same" cross-correlation over channels:
    #   band[i, j] = w[i - j + PAD]  for |i - j| <= PAD, else 0.
    row = lax.broadcasted_iota(jnp.int32, (C, C), 0)
    col = lax.broadcasted_iota(jnp.int32, (C, C), 1)
    band = jnp.zeros((C, C), jnp.float32)
    for t in range(K):                                     # K is tiny (3): K selects total
        band = jnp.where(row - col == (t - PAD), w_ref[t], band)

    # y[b, j] = sum_i pooled[b, i] * w[i - j + PAD]  ==  Conv1d(1,1,K,pad)(pooled)
    y = jnp.dot(pooled, band, preferred_element_type=jnp.float32)   # (Bblk, C)

    out_ref[...] = jax.nn.sigmoid(y).astype(out_ref.dtype)          # single fused store


@functools.partial(jax.jit, static_argnames=("batch_block",))
def eca_forward(x, w, *, batch_block=None):
    """x: (B, C, H, W); w: Conv1d weight (1, 1, K).  Returns (B, C) attention weights."""
    B, C, H, W = x.shape
    K = w.shape[-1]
    PAD = K // 2
    if batch_block is None:
        batch_block = B                 # whole batch in one grid step (tiny working set)
    assert B % batch_block == 0

    x2 = x.reshape(B, C, H * W)         # free contiguous reshape -> lane-dense last dim
    wf = w.reshape(K).astype(jnp.float32)

    kernel = functools.partial(_eca_kernel, K=K, PAD=PAD, inv_hw=1.0 / float(H * W))
    return pl.pallas_call(
        kernel,
        out_shape=jax.ShapeDtypeStruct((B, C), jnp.float32),
        grid=(B // batch_block,),
        in_specs=[
            pl.BlockSpec(memory_space=pltpu.MemorySpace.SMEM),              # conv taps
            pl.BlockSpec((batch_block, C, H * W), lambda i: (i, 0, 0)),     # inputs
        ],
        out_specs=pl.BlockSpec((batch_block, C), lambda i: (i, 0)),
        compiler_params=pltpu.CompilerParams(dimension_semantics=("parallel",)),
    )(wf, x2)


# ---------------- pure-JAX reference (independent formulation) ----------------
def ref_forward(x, w):
    B, C, H, W = x.shape
    K = w.shape[-1]
    PAD = K // 2
    pooled = jnp.mean(x, axis=(2, 3))                       # (B, C)
    padded = jnp.pad(pooled, ((0, 0), (PAD, PAD)))          # zero "same" padding
    taps = w.reshape(-1)
    y = sum(taps[t] * padded[:, t:t + C] for t in range(K))  # cross-correlation
    return jax.nn.sigmoid(y)                                 # (B, C)


if __name__ == "__main__":
    key = jax.random.PRNGKey(0)
    kx, kw = jax.random.split(key)

    B, C, H, W = 2, 16, 16, 16
    K = eca_kernel_size(C)              # -> 3 (padding 1), same as the PyTorch module

    x = jax.random.normal(kx, (B, C, H, W), jnp.float32)
    w = jax.random.normal(kw, (1, 1, K), jnp.float32) * 0.5   # Conv1d(1,1,K,bias=False)

    out = jax.block_until_ready(eca_forward(x, w))
    ref = ref_forward(x, w)

    assert out.shape == (B, C)
    max_err = float(jnp.max(jnp.abs(out - ref)))
    assert max_err < 1e-4, f"mismatch vs reference: {max_err}"
    print("KERNEL_OK")
</pallas_src>

<mosaic_0001>
module attributes {stable_mosaic.version = 11 : i64} {
  func.func @_eca_kernel(%arg0: i32, %arg1: memref<3xf32, #tpu.memory_space<smem>>, %arg2: memref<2x16x256xf32, #tpu.memory_space<vmem>>, %arg3: memref<2x16xf32, #tpu.memory_space<vmem>>) attributes {dimension_semantics = [#tpu.dimension_semantics<parallel>], iteration_bounds = array<i64: 1>, scalar_prefetch = 0 : i64, scratch_operands = 0 : i64, tpu.core_type = #tpu.core_type<tc>, window_params = [{transform_indices = @transform_0, window_bounds = array<i64: 3>}, {transform_indices = @transform_1, window_bounds = array<i64: 2, 16, 256>}, {transform_indices = @transform_2, window_bounds = array<i64: 2, 16>}]} {
    %c0 = arith.constant 0 : index
    %c0_0 = arith.constant 0 : index
    %c0_1 = arith.constant 0 : index
    %0 = vector.load %arg2[%c0, %c0_0, %c0_1] : memref<2x16x256xf32, #tpu.memory_space<vmem>>, vector<2x16x256xf32>
    %cst = arith.constant dense<0.000000e+00> : vector<2x16xf32>
    %1 = vector.multi_reduction <add>, %0, %cst [2] : vector<2x16x256xf32> to vector<2x16xf32>
    %cst_2 = arith.constant 3.906250e-03 : f32
    %2 = vector.broadcast %cst_2 : f32 to vector<2x16xf32>
    %3 = arith.mulf %1, %2 : vector<2x16xf32>
    %4 = tpu.iota {dimensions = array<i32: 0>} : vector<16x16xi32>
    %5 = tpu.iota {dimensions = array<i32: 1>} : vector<16x16xi32>
    %cst_3 = arith.constant 0.000000e+00 : f32
    %6 = vector.broadcast %cst_3 : f32 to vector<16x16xf32>
    %7 = arith.subi %4, %5 : vector<16x16xi32>
    %c-1_i32 = arith.constant -1 : i32
    %8 = vector.broadcast %c-1_i32 : i32 to vector<16x16xi32>
    %9 = arith.cmpi eq, %7, %8 : vector<16x16xi32>
    %c0_4 = arith.constant 0 : index
    %10 = memref.load %arg1[%c0_4] : memref<3xf32, #tpu.memory_space<smem>>
    %11 = vector.broadcast %10 : f32 to vector<16x16xf32>
    %12 = arith.select %9, %11, %6 : vector<16x16xi1>, vector<16x16xf32>
    %13 = arith.subi %4, %5 : vector<16x16xi32>
    %c0_i32 = arith.constant 0 : i32
    %14 = vector.broadcast %c0_i32 : i32 to vector<16x16xi32>
    %15 = arith.cmpi eq, %13, %14 : vector<16x16xi32>
    %c1 = arith.constant 1 : index
    %16 = memref.load %arg1[%c1] : memref<3xf32, #tpu.memory_space<smem>>
    %17 = vector.broadcast %16 : f32 to vector<16x16xf32>
    %18 = arith.select %15, %17, %12 : vector<16x16xi1>, vector<16x16xf32>
    %19 = arith.subi %4, %5 : vector<16x16xi32>
    %c1_i32 = arith.constant 1 : i32
    %20 = vector.broadcast %c1_i32 : i32 to vector<16x16xi32>
    %21 = arith.cmpi eq, %19, %20 : vector<16x16xi32>
    %c2 = arith.constant 2 : index
    %22 = memref.load %arg1[%c2] : memref<3xf32, #tpu.memory_space<smem>>
    %23 = vector.broadcast %22 : f32 to vector<16x16xf32>
    %24 = arith.select %21, %23, %18 : vector<16x16xi1>, vector<16x16xf32>
    %cst_5 = arith.constant dense<0.000000e+00> : vector<2x16xf32>
    %25 = tpu.matmul %3, %24, %cst_5 {dimension_numbers = #tpu.dot_dimension_numbers<[1], [0], [0], [1], [0, 0, 1, 1], [], []>} : vector<2x16xf32>, vector<16x16xf32>, vector<2x16xf32> -> vector<2x16xf32>
    %26 = arith.negf %25 : vector<2x16xf32>
    %27 = math.exp %26 : vector<2x16xf32>
    %cst_6 = arith.constant 1.000000e+00 : f32
    %28 = vector.broadcast %cst_6 : f32 to vector<2x16xf32>
    %29 = arith.addf %28, %27 : vector<2x16xf32>
    %30 = arith.divf %28, %29 : vector<2x16xf32>
    %c0_7 = arith.constant 0 : index
    %c0_8 = arith.constant 0 : index
    %31 = vector.load %arg3[%c0_7, %c0_8] : memref<2x16xf32, #tpu.memory_space<vmem>>, vector<2x16xf32>
    tpu.vector_store %arg3[%c0_7, %c0_8], %30 {strides = array<i32>} : memref<2x16xf32, #tpu.memory_space<vmem>>, vector<2x16xf32>,
    return
  }
  func.func @transform_0(%arg0: i32) -> i32 {
    %c0_i32 = arith.constant 0 : i32
    %c0_i32_0 = arith.constant 0 : i32
    return %c0_i32 : i32
  }
  func.func @transform_1(%arg0: i32) -> (i32, i32, i32) {
    %c0_i32 = arith.constant 0 : i32
    %c0_i32_0 = arith.constant 0 : i32
    %c0_i32_1 = arith.constant 0 : i32
    return %arg0, %c0_i32, %c0_i32_0 : i32, i32, i32
  }
  func.func @transform_2(%arg0: i32) -> (i32, i32) {
    %c0_i32 = arith.constant 0 : i32
    %c0_i32_0 = arith.constant 0 : i32
    return %arg0, %c0_i32 : i32, i32
  }
}

</mosaic_0001>

<bundles_post_ra>
// kernel: eca_forward.1
= control target key start
LH: loop header
LB: loop body
LE: loop exit
PB: predicated region body
PF: predicated region fallthrough
CT: control target
= control target key end

     0   :  { %7 = vsyncpa [#allocation4], 0  ;;  %s246_s0 = inlined_call_operand.vmem [shape: f32[3], index: 0, kind: input, shape index: {}]   ;;  %s247_s1 = inlined_call_operand.vmem [shape: f32[2,16,256], index: 1, kind: input, shape index: {}]   ;;  %s248_s2 = inlined_call_operand.hbm [shape: f32[2,16], index: 2, kind: output, shape index: {}]  }
   0x1   :  { %8 = vsyncpa [#allocation3], 0  ;;  %s14_s11 = sshll.u32 %s246_s0, 4  ;;  %s199_s12 = smov [#allocation2]   ;;  %s15_s11 = int_to_ptr.vmem [resolvable:$true] %s14_s11 }
   0x2   :  { %17 = dma.vmem_to_smem %s15_s11, 16, %s199_s12, [#allocation4]  }
   0x3   :  { %195 = dma.done.wait [#allocation4], 16  }
   0x4   :  { %196 = vsyncadd [#allocation4], 4294967280 }
   0x5   :  { %24 = sfence }
   0x6   :  { %v29_v0 = vld [vmem:[%s247_s1 + $0x20] sm:$0xff]  ;;  %v30_v1 = vld [vmem:[%s247_s1 + $0x28] sm:$0xff]  ;;  %v31_v6 = vld [vmem:[%s247_s1 + $0x30] sm:$0xff]  ;;  %v49_v12 = vlaneseq  ;;  %s58_s28 = sld [smem:[#allocation2]]  ;;  %vm81_vm6 = vcmask 130112   ;;  %vm86_vm7 = vcmask 1041409  }
   0x7   :  { %v25_v2 = vld [vmem:[%s247_s1] sm:$0xff]  ;;  %v39_v3 = vadd.f32 %v30_v1, %v29_v0  ;;  %v26_v4 = vld [vmem:[%s247_s1 + $0x8] sm:$0xff]  ;;  %v32_v7 = vld [vmem:[%s247_s1 + $0x38] sm:$0xff]  ;;  %s149_s29 = sld [smem:[#allocation2 + $0x1]]  ;;  %vm88_vm8 = vcmask 130048   ;;  %s139_s6 = sshll.u32 %s248_s2, 4  ;;  %s140_s6 = int_to_ptr.hbm [resolvable:$true] %s139_s6 }
   0x8   :  { %v33_v5 = vadd.f32 %v26_v4, %v25_v2  ;;  %v27_v8 = vld [vmem:[%s247_s1 + $0x10] sm:$0xff]  ;;  %v28_v9 = vld [vmem:[%s247_s1 + $0x18] sm:$0xff]  ;;  %v42_v10 = vadd.f32 %v32_v7, %v31_v6  ;;  %v50_v13 = vshrl.u32 %v49_v12, 7  ;;  %s150_s30 = sld [smem:[#allocation2 + $0x2]]  ;;  %v53_v14 = vand.u32 127, %v49_v12  ;;  %s200_s1 = smov [#allocation5]  }
   0x9   :  { %40 = vadd.xlane.f32.xlu1 %v39_v3  ;;  %v36_v11 = vadd.f32 %v28_v9, %v27_v8  ;;  %s137_s3 = sshll.u32 %s200_s1, 4  ;;  %vm130_vm12 = vcmask 123904   ;;  %s138_s3 = int_to_ptr.vmem [resolvable:$true] %s137_s3 }
   0xa   :  { %34 = vadd.xlane.f32.xlu0 %v33_v5  ;;  %v51_v15 = vadd.s32 8, %v50_v13  ;;  %v54_v18 = vsub.s32 %v50_v13, %v53_v14  ;;  %v79_v30 = vadd.s32 4294967288, %v53_v14 }
   0xc   :  { %v55_v16 = vsub.s32 %v51_v15, %v53_v14  ;;  %v59_v17 = vstv %s58_s28  ;;  %vm56_vm3 = vcmp.eq.s32.totalorder %v54_v18, 4294967295  ;;  %vm62_vm4 = vcmp.eq.s32.totalorder %v54_v18, 0 }
   0xd   :  { %v65_v20 = vstv %s149_s29  ;;  %v60_v24 = vsel %vm56_vm3, %v59_v17, 0.0  ;;  %vm68_vm5 = vcmp.eq.s32.totalorder %v54_v18, 1 }
   0xe   :  { %vm57_vm0 = vcmp.eq.s32.totalorder %v55_v16, 4294967295  ;;  %vm63_vm1 = vcmp.eq.s32.totalorder %v55_v16, 0  ;;  %vm69_vm2 = vcmp.eq.s32.totalorder %v55_v16, 1  ;;  %v71_v22 = vstv %s150_s30 }
   0xf   :  { %v61_v19 = vsel %vm57_vm0, %v59_v17, 0.0  ;;  %v66_v25 = vsel %vm62_vm4, %v65_v20, %v60_v24 }
  0x10   :  { %v67_v21 = vsel %vm63_vm1, %v65_v20, %v61_v19  ;;  %v72_v26 = vsel %vm68_vm5, %v71_v22, %v66_v25 }
  0x11   :  { %43 = vadd.xlane.f32.xlu1 %v42_v10  ;;  %v73_v23 = vsel %vm69_vm2, %v71_v22, %v67_v21 }
  0x12   :  { %37 = vadd.xlane.f32.xlu0 %v36_v11  ;;  %105 = vmatpush.msra.mxu0 %v73_v23 }
  0x14   :  { %106 = vmatpush.msra.mxu0 %v72_v26 }
  0x7c   :  { %v41_v27 = vpop.xlane.xlu1 %40 }
  0x7d   :  { %v35_v28 = vpop.xlane.xlu0 %34  ;;  %v47_v29 = vmul.f32 0.00390625, %v41_v27 }
  0x7e   :  { %v45_v31 = vmul.f32 0.00390625, %v35_v28 }
  0x7f   :  { %v83_v36 = vperm.slane %v47_v29, %v53_v14 }
  0x80   :  { %v78_v38 = vperm.slane %v45_v31, %v53_v14 }
  0x84   :  { %v44_v32 = vpop.xlane.xlu1 %43 }
  0x85   :  { %v48_v33 = vmul.f32 0.00390625, %v44_v32  ;;  %v38_v34 = vpop.xlane.xlu0 %37 }
  0x86   :  { %v46_v35 = vmul.f32 0.00390625, %v38_v34 }
  0x87   :  { %v84_v37 = vperm.slane %v48_v33, %v79_v30 }
  0x88   :  { %v80_v39 = vperm.slane %v46_v35, %v79_v30 }
  0x89   :  { %v85_v40 = vsel %vm81_vm6, %v84_v37, %v83_v36 }
  0x8a   :  { %v82_v41 = vsel %vm81_vm6, %v80_v39, %v78_v38 }
  0x8b   :  { %v87_v42 = vsel %vm86_vm7, %v85_v40, %v82_v41 }
  0x8c   :  { %151 = vmatmul.msk.f32.vlgmr.msra.gmra.mxu0 %vm88_vm8, %v87_v42 }
 0x109   :  { %v108_v43 = vpop.f32.mrf.mxu0 }
 0x10a   :  { %v152_v44 = vmul.f32 -1.442695, %v108_v43 }
 0x10c   :  { %155 = vpow2.f32 %v152_v44 }
 0x112   :  { %v156_v45 = vpop.eup %155 }
 0x113   :  { %v114_v46 = vadd.f32 1.0, %v156_v45 }
 0x115   :  { %157 = vrcp.f32 %v114_v46  ;;  %v126_v50 = vand.u32 2147483648, %v114_v46  ;;  %v124_v52 = vand.u32 2147483647, %v114_v46  ;;  %vm120_vm10 = vweird.f32 %v114_v46 }
 0x117   :  { %v127_v54 = vor.u32 1.1754944e-38, %v126_v50  ;;  %vm125_vm13 = vcmp.eq.f32.partialorder %v124_v52, 8.507059e+37 }
 0x11b   :  { %v158_v47 = vpop.eup %157 }
 0x11c   :  { %v116_v48 = vmul.f32 %v158_v47, %v114_v46  ;;  %vm121_vm9 = vweird.f32 %v158_v47 }
 0x11d   :  { %vm122_vm11 = vmor %vm120_vm10, %vm121_vm9 }
 0x11e   :  { %v117_v49 = vsub.f32 1.0, %v116_v48 }
 0x120   :  { %v118_v51 = vmul.f32 %v158_v47, %v117_v49 }
 0x122   :  { %v119_v53 = vadd.f32 %v158_v47, %v118_v51 }
 0x124   :  { %v123_v55 = vsel %vm122_vm11, %v158_v47, %v119_v53 }
 0x125   :  { %v128_v56 = vsel %vm125_vm13, %v127_v54, %v123_v55 }
 0x126   :  { %131 = vst.msk [vmem:[#allocation5] sm:$0x3] %vm130_vm12, %v128_v56 }
 0x127   :  { %142 = dma.vmem_to_hbm [thread:$0]  %s138_s3, 32, %s140_s6, [#allocation3]  }
 0x128   :  { %197 = dma.done.wait [#allocation3], 32  }
 0x129   :  { %198 = vsyncadd [#allocation3], 4294967264 }
 0x12a   :  { %147 = vsyncpa [#allocation3], 1 }
 0x12b   :  { %148 = vsyncpa [#allocation4], 1 }

</bundles_post_ra>
